<compile_context>
chip_gen: v7x
topology: tpu7x:2x2x1
jax: 0.10.0
libtpu: 0.0.40
codegen_flags: <defaults>
</compile_context>

<pallas_src>
import jax
import jax.numpy as jnp
import numpy as np
from jax.experimental import pallas as pl
from jax.experimental.pallas import tpu as pltpu

MONTH_SIZE, DAY_SIZE, HOUR_SIZE = 13, 32, 24
_LANE = 128


# ----------------------------------------------------------------------------
# Pallas kernel: lane-dense broadcast add
#   x block:    (b_tile, c_tile, L)
#   bias block: (b_tile, 1,      L)   -> broadcast across the c_tile sublane rows
# ----------------------------------------------------------------------------
def _add_bias_kernel(x_ref, bias_ref, o_ref):
    o_ref[...] = x_ref[...] + bias_ref[...]


def _vmem_capacity_bytes():
    """Physical per-core VMEM (generation-aware), with a conservative fallback."""
    try:
        return int(pltpu.get_tpu_info().vmem_capacity_bytes)
    except Exception:
        return 64 << 20        # assume v7x-sized VMEM if the query is unavailable


def _choose_tiles(B, C, L, itemsize, vmem_cap):
    """Pick (b_tile, c_tile): ~budget-sized tiles, dtype-aware sublane alignment,
    and >= 2 (preferably even, when small) grid steps for v7x's two TCs."""
    # dtype-aware sublane alignment: f32 -> 8, bf16 -> 16, int8/fp8 -> 32
    sub_align = max(8, 32 // itemsize)
    # Per-tile budget: ~8 MiB on v7x (64 MiB VMEM), ~16 MiB on v5e/v6e (128 MiB).
    budget = max(4 << 20, min(16 << 20, vmem_cap // 8))
    row_bytes = L * itemsize
    max_rows = max(1, budget // row_bytes)       # rows of length L per tile

    if max_rows >= C:
        # Whole C axis fits in one tile -> pack multiple batches per block so
        # B-heavy / C-light shapes don't degenerate into B tiny steps.
        c_tile = C
        b_tile = max(1, min(B, max_rows // C))
    else:
        c_tile = min(C, max(sub_align, (max_rows // sub_align) * sub_align))
        b_tile = 1

    # Guarantee >= 2 grid steps ("parallel" axes are sharded across v7x's 2 TCs);
    # prefer an even step count while the total is small, for balance.
    def n_steps(bt, ct):
        return (-(-B // bt)) * (-(-C // ct))

    for _ in range(8):
        n = n_steps(b_tile, c_tile)
        if n >= 2 and (n >= 8 or n % 2 == 0):
            break
        if b_tile > 1:
            b_tile = max(1, b_tile // 2)
        elif c_tile >= 2 * sub_align:
            c_tile = max(sub_align, ((c_tile // 2) // sub_align) * sub_align)
        else:
            break   # cannot split further without breaking (8,128) block alignment
    return b_tile, c_tile


def position_embedding(x, x_mark, node_pos, w1, b1, w2, b2,
                       month_table, day_table, hour_table, *, donate_x=False):
    """Forward of PositionEmbedding (if_rel=False): x + time_emb + node_emb."""
    B, C, N, D = x.shape
    L = N * D
    itemsize = x.dtype.itemsize

    # ---- tiny O((B+N)*D) bias precompute (plain XLA; hoisted out of the grid) ----
    sizes = jnp.array([MONTH_SIZE, DAY_SIZE, HOUR_SIZE], dtype=x_mark.dtype)
    # torch .long() truncates toward zero.  Indices are clamped to the table
    # bounds: PyTorch's nn.Embedding would raise for x_mark == 1.0 or negative
    # values, but TPU VMEM reads are not bounds-checked, so we clamp instead
    # (deliberate, documented divergence).
    idx = (x_mark[:, :3] * sizes).astype(jnp.int32)
    idx = jnp.clip(idx, 0, jnp.array([MONTH_SIZE - 1, DAY_SIZE - 1, HOUR_SIZE - 1],
                                     dtype=jnp.int32))
    time_emb = (month_table[idx[:, 0]] + day_table[idx[:, 1]]
                + hour_table[idx[:, 2]])                                   # (B, D)
    node_emb = jnp.maximum(node_pos @ w1 + b1, 0.0) @ w2 + b2              # (N, D)
    bias = (time_emb[:, None, :] + node_emb[None, :, :]).astype(x.dtype)   # (B, N, D)

    # ---- lane-dense layout: flatten (N, D) -> L; pad L to a multiple of 128 so
    # output stores are full-width unmasked vst (biggest single lever here). ----
    L_pad = (-(-L // _LANE)) * _LANE
    x3 = x.reshape(B, C, L)
    bias3 = bias.reshape(B, 1, L)
    if L_pad != L:
        # Fallback path for configs where N*D is not 128-aligned (extra copy).
        x3 = jnp.pad(x3, ((0, 0), (0, 0), (0, L_pad - L)))
        bias3 = jnp.pad(bias3, ((0, 0), (0, 0), (0, L_pad - L)))

    vmem_cap = _vmem_capacity_bytes()
    b_tile, c_tile = _choose_tiles(B, C, L_pad, itemsize, vmem_cap)
    grid = (pl.cdiv(B, b_tile), pl.cdiv(C, c_tile))

    # Double-buffered x-in + out tiles + double-buffered bias tile, with headroom;
    # never request more than ~3/4 of physical VMEM (Mosaic internal scratch).
    vmem_need = (4 * b_tile * c_tile * L_pad + 2 * b_tile * L_pad) * itemsize
    vmem_limit = int(min((vmem_cap * 3) // 4, max(32 << 20, 2 * vmem_need)))

    out3 = pl.pallas_call(
        _add_bias_kernel,
        out_shape=jax.ShapeDtypeStruct((B, C, L_pad), x.dtype),
        grid=grid,
        in_specs=[
            pl.BlockSpec((b_tile, c_tile, L_pad), lambda bi, ci: (bi, ci, 0)),
            # NOTE: keep the C-block grid axis innermost -- the bias block index
            # depends only on bi, so its DMA is elided across consecutive ci
            # steps.  Do not reorder the grid to (ci, bi).
            pl.BlockSpec((b_tile, 1, L_pad), lambda bi, ci: (bi, 0, 0)),
        ],
        out_specs=pl.BlockSpec((b_tile, c_tile, L_pad), lambda bi, ci: (bi, ci, 0)),
        compiler_params=pltpu.CompilerParams(
            dimension_semantics=("parallel", "parallel"),
            vmem_limit_bytes=vmem_limit),
        # Optional: alias x to the output (halves HBM footprint of the op) when
        # the caller does not reuse x afterwards.
        input_output_aliases=({0: 0} if donate_x else {}),
    )(x3, bias3)

    if L_pad != L:
        out3 = out3[:, :, :L]
    return out3.reshape(B, C, N, D)


if __name__ == "__main__":
    key = jax.random.PRNGKey(0)
    B, C, N, D = 2, 4, 8, 32          # batch, channels, num_nodes, d_model
    keys = jax.random.split(key, 10)

    x = jax.random.normal(keys[0], (B, C, N, D), dtype=jnp.float32)
    x_mark = jax.random.uniform(keys[1], (B, 3), dtype=jnp.float32)  # [month, day, hour]

    # Synthetic node positions + StandardScaler (replaces pos_data.npy load).
    node_pos_raw = jax.random.normal(keys[2], (N, 3), dtype=jnp.float32) * 5.0 + 2.0
    node_pos = ((node_pos_raw - node_pos_raw.mean(0, keepdims=True))
                / node_pos_raw.std(0, keepdims=True))

    # SpatialEmbedding (if_rel=False): Linear(3,D) -> ReLU -> Linear(D,D)
    w1 = jax.random.normal(keys[3], (3, D), dtype=jnp.float32) * 0.1
    b1 = jax.random.normal(keys[4], (1, D), dtype=jnp.float32) * 0.01
    w2 = jax.random.normal(keys[5], (D, D), dtype=jnp.float32) * 0.1
    b2 = jax.random.normal(keys[6], (1, D), dtype=jnp.float32) * 0.01

    # TemporalEmbedding tables (month_size=13, day_size=32, hour_size=24)
    month_table = jax.random.normal(keys[7], (13, D), dtype=jnp.float32) * 0.1
    day_table = jax.random.normal(keys[8], (32, D), dtype=jnp.float32) * 0.1
    hour_table = jax.random.normal(keys[9], (24, D), dtype=jnp.float32) * 0.1

    out = position_embedding(x, x_mark, node_pos, w1, b1, w2, b2,
                             month_table, day_table, hour_table)
    out = jax.block_until_ready(out)

    # Pure-JAX reference check (same clamp as the kernel -- boundary behavior vs.
    # PyTorch's error-on-OOB is a documented divergence, not validated here).
    idx = jnp.stack([
        jnp.clip((x_mark[:, 0] * 13).astype(jnp.int32), 0, 12),
        jnp.clip((x_mark[:, 1] * 32).astype(jnp.int32), 0, 31),
        jnp.clip((x_mark[:, 2] * 24).astype(jnp.int32), 0, 23),
    ], axis=1)
    time_ref = month_table[idx[:, 0]] + day_table[idx[:, 1]] + hour_table[idx[:, 2]]
    node_ref = jnp.maximum(node_pos @ w1 + b1, 0.0) @ w2 + b2
    ref = x + time_ref[:, None, None, :] + node_ref[None, None, :, :]
    assert np.allclose(np.asarray(out), np.asarray(ref), atol=1e-5, rtol=1e-5), \
        "mismatch vs reference"

    print("KERNEL_OK")
</pallas_src>

<mosaic_0001>
module attributes {stable_mosaic.version = 11 : i64} {
  func.func @_add_bias_kernel(%arg0: i32, %arg1: i32, %arg2: memref<1x4x256xf32, #tpu.memory_space<vmem>>, %arg3: memref<1x1x256xf32, #tpu.memory_space<vmem>>, %arg4: memref<1x4x256xf32, #tpu.memory_space<vmem>>) attributes {dimension_semantics = [#tpu.dimension_semantics<parallel>, #tpu.dimension_semantics<parallel>], iteration_bounds = array<i64: 2, 1>, scalar_prefetch = 0 : i64, scratch_operands = 0 : i64, tpu.core_type = #tpu.core_type<tc>, window_params = [{transform_indices = @transform_0, window_bounds = array<i64: 1, 4, 256>}, {transform_indices = @transform_1, window_bounds = array<i64: 1, 1, 256>}, {transform_indices = @transform_2, window_bounds = array<i64: 1, 4, 256>}]} {
    %c0 = arith.constant 0 : index
    %c0_0 = arith.constant 0 : index
    %c0_1 = arith.constant 0 : index
    %0 = vector.load %arg2[%c0, %c0_0, %c0_1] : memref<1x4x256xf32, #tpu.memory_space<vmem>>, vector<1x4x256xf32>
    %c0_2 = arith.constant 0 : index
    %c0_3 = arith.constant 0 : index
    %c0_4 = arith.constant 0 : index
    %1 = vector.load %arg3[%c0_2, %c0_3, %c0_4] : memref<1x1x256xf32, #tpu.memory_space<vmem>>, vector<1x1x256xf32>
    %2 = vector.broadcast %1 : vector<1x1x256xf32> to vector<1x4x256xf32>
    %3 = arith.addf %0, %2 : vector<1x4x256xf32>
    %c0_5 = arith.constant 0 : index
    %c0_6 = arith.constant 0 : index
    %c0_7 = arith.constant 0 : index
    %4 = vector.load %arg4[%c0_5, %c0_6, %c0_7] : memref<1x4x256xf32, #tpu.memory_space<vmem>>, vector<1x4x256xf32>
    tpu.vector_store %arg4[%c0_5, %c0_6, %c0_7], %3 {strides = array<i32>} : memref<1x4x256xf32, #tpu.memory_space<vmem>>, vector<1x4x256xf32>,
    return
  }
  func.func @transform_0(%arg0: i32, %arg1: i32) -> (i32, i32, i32) {
    %c0_i32 = arith.constant 0 : i32
    %c0_i32_0 = arith.constant 0 : i32
    return %arg0, %arg1, %c0_i32 : i32, i32, i32
  }
  func.func @transform_1(%arg0: i32, %arg1: i32) -> (i32, i32, i32) {
    %c0_i32 = arith.constant 0 : i32
    %c0_i32_0 = arith.constant 0 : i32
    %c0_i32_1 = arith.constant 0 : i32
    return %arg0, %c0_i32, %c0_i32_0 : i32, i32, i32
  }
  func.func @transform_2(%arg0: i32, %arg1: i32) -> (i32, i32, i32) {
    %c0_i32 = arith.constant 0 : i32
    %c0_i32_0 = arith.constant 0 : i32
    return %arg0, %arg1, %c0_i32 : i32, i32, i32
  }
}

</mosaic_0001>

<bundles_post_ra>
// kernel: tpu_custom_call.1
= control target key start
LH: loop header
LB: loop body
LE: loop exit
PB: predicated region body
PF: predicated region fallthrough
CT: control target
= control target key end

     0   :  { %7 = vsyncpa [#allocation3], 0  ;;  %s825_s0 = inlined_call_operand.hbm [shape: f32[2,4,256], index: 0, kind: input, shape index: {}]   ;;  %s826_s1 = inlined_call_operand.hbm [shape: f32[2,1,256], index: 1, kind: input, shape index: {}]   ;;  %s827_s2 = inlined_call_operand.hbm [shape: f32[2,4,256], index: 2, kind: output, shape index: {}]  }
   0x1   :  { %9 = vsyncpa [#allocation3 + $0x1], 0 }
   0x2   :  { %10 = vsyncpa [#allocation6], 0 }
   0x3   :  { %12 = vsyncpa [#allocation6 + $0x1], 0 }
   0x4   :  { %13 = vsyncpa [#allocation4], 0 }
   0x5   :  { %15 = vsyncpa [#allocation4 + $0x1], 0  ;;  %s610_s9 = smov 0   ;;  %s612_s10 = smov 0  }
   0x6   :  { %s614_s11 = smov 0   ;;  %s616_s12 = smov 0  }
   0x7   :  { %s618_s13 = smov 0   ;;  %s620_s14 = smov 0  }
   0x8 LB: > { %s355_s15 = sadd.s32 4294967295, %s590_s14   ;;  %s356_s16 = sadd.s32 4294967294, %s590_s14   ;;  %s590_s14 = sphi %s620_s14, %s21_s14   ;;  %s586_s13 = sphi %s618_s13, %s847_s13   ;;  %s582_s12 = sphi %s616_s12, %s846_s12   ;;  %s578_s11 = sphi %s614_s11, %s845_s11   ;;  %s574_s10 = sphi %s612_s10, %s844_s10   ;;  %s570_s9 = sphi %s610_s9, %s843_s9  }
   0x9   : > { %s33_s17 = sadd.s32 1, %s586_s13  ;;  %s42_s18 = sadd.s32 1, %s578_s11 }
   0xa   : > { %p35_p0 = scmp.ge.s32.totalorder %s33_s17, 2  ;;  %p49_p1 = scmp.ne.s32.totalorder %s578_s11, %s574_s10 }
   0xb   : > { %p50_p2 = scmp.eq.s32.totalorder %s590_s14, 0  ;;  %p55_p3 = scmp.ne.s32.totalorder %s574_s10, %s570_s9 }
   0xc   : > { %s849_s17 = smov (%p35_p0, %s33_s17), 0  ;;  %p56_p5 = scmp.eq.s32.totalorder %s355_s15, 0 }
   0xd   : > { %p651_p4 = por %p50_p2, %p49_p1  ;;  %s37_s20 = ssub.s32 %s586_s13, %s849_s17 }
   0xe   : > { %p107_p6 = scmp.eq.s32.totalorder %s355_s15, 1  ;;  %p40_p7 = scmp.eq.s32.totalorder %s37_s20, 0 }
   0xf   : > { %p657_p8 = por %p56_p5, %p55_p3  ;;  %p113_p10 = scmp.eq.s32.totalorder %s356_s16, 1 }
  0x10   : > { %p661_p9 = por %p107_p6, %p49_p1  ;;  %p394_p13 = scmp.lt.s32.totalorder %s590_s14, 2 }
  0x11   : > { %s831_s21 = scalar_select %p657_p8, 1, 0 }
  0x12   : > { %s832_s22 = scalar_select %p661_p9, 1, 0 }
  0x13   : > { %s666_s23 = scalar_select %p40_p7, %s578_s11, %s42_s18  }
  0x14   : > { %p668_p11 = por %p113_p10, %p55_p3  ;;  %s675_s25 = sand.u32 1, %s578_s11  }
  0x15   : > { %s359_s26 = sshll.u32 %s675_s25, 3  ;;  %s374_s27 = sshll.u32 %s586_s13, 7 }
  0x16   : > { %s833_s24 = scalar_select %p668_p11, 1, 0 }
  0x17   : > { %s682_s30 = scalar_lea.hbm %s825_s0, %s374_s27  ;;  %s137_s3 = scalar_lea.vmem [#allocation2], %s359_s26 }
  0x18   : > { %s147_s4 = sshll.u32 %s137_s3, 4  ;;  %p688_p0 = pnand %p394_p13, %p651_p4  ;;  %s684_s4 = int_to_ptr.vmem [resolvable:$true] %s147_s4 }
  0x19   : > { %s134_s6 = scalar_lea.sflag [#allocation3], %s675_s25  ;;  %s444_s7 = scalar_lea.hbm %s682_s30, 128 }
  0x1a   : > { %p445_p3 = scmp.ne.s32.totalorder %s682_s30, %s444_s7  ;;  %p446_p5 = pneg %p688_p0 }
  0x1b   : > { %s449_s16 = scalar_lea.hbm %s825_s0, 256  ;;  %p450_p4 = scmp.lt.u32.totalorder %s682_s30, %s825_s0 }
  0x1c   : > { %p447_p6 = pnand %p446_p5, %p445_p3  ;;  %p451_p10 = scmp.lt.u32.totalorder %s449_s16, %s444_s7 }
  0x1d   : > { %p453_p12 = scmp.lt.u32.totalorder %s444_s7, %s682_s30 }
  0x1e   : > { %p448_p7 = pneg %p447_p6  ;;  %p452_p13 = por %p451_p10, %p450_p4 }
  0x20   : > { %p454_p1 = por %p453_p12, %p452_p13 }
  0x22   : > { %p455_p2 = pnand %p454_p1, %p448_p7 }
  0x24   : > { %458 = shalt.err (!%p455_p2)
}
  0x25   : > { %s459_s20 = scalar_lea.vmem %s684_s4, 128  ;;  %s592_s26 = smov [#allocation2]  }
  0x26   : > { %p460_p3 = scmp.ne.s32.totalorder %s684_s4, %s459_s20  ;;  %s464_s27 = sshll.u32 %s592_s26, 4  ;;  %s465_s27 = int_to_ptr.vmem [resolvable:$false] %s464_s27 }
  0x27   : > { %s466_s28 = scalar_lea.vmem %s465_s27, 256  ;;  %p467_p9 = scmp.lt.s32.totalorder %s684_s4, %s465_s27 }
  0x28   : > { %p462_p6 = pnand %p460_p3, %p446_p5  ;;  %p468_p4 = scmp.lt.s32.totalorder %s466_s28, %s459_s20 }
  0x2a   : > { %p463_p11 = pneg %p462_p6  ;;  %p469_p10 = por %p468_p4, %p467_p9 }
  0x2c   : > { %p470_p12 = pnand %p469_p10, %p463_p11 }
  0x2e   : > { %473 = shalt.err (!%p470_p12)
}
  0x2f   : > { %386 = dma.hbm_to_vmem [thread:$0]  (!%p688_p0), %s682_s30, 128, %s684_s4, %s134_s6  }
  0x30   : > { %p835_p1 = scmp.lt.s32.totalorder %s590_s14, 3  ;;  %p836_p2 = scmp.ge.s32.totalorder %s590_s14, 1 }
  0x31   : > { %s362_s3 = sshll.u32 %s675_s25, 1  ;;  %s375_s7 = sshll.u32 %s586_s13, 5 }
  0x32   : > { %p724_p7 = pnand %p836_p2, %p835_p1  ;;  %s733_s16 = scalar_lea.hbm %s826_s1, %s375_s7 }
  0x33   : > { %s158_s18 = scalar_lea.vmem [#allocation5], %s362_s3  ;;  %s155_s30 = scalar_lea.sflag [#allocation6], %s675_s25 }
  0x34   : > { %s837_s29 = scalar_select %p724_p7, 1, 0 }
  0x35   : > { %s166_s19 = sshll.u32 %s158_s18, 4  ;;  %s474_s4 = scalar_lea.hbm %s733_s16, 32  ;;  %s167_s19 = int_to_ptr.vmem [resolvable:$true] %s166_s19 }
  0x36   : > { %p475_p9 = scmp.ne.s32.totalorder %s733_s16, %s474_s4  ;;  %s479_s26 = scalar_lea.hbm %s826_s1, 64 }
  0x37   : > { %p480_p3 = scmp.lt.u32.totalorder %s733_s16, %s826_s1  ;;  %p481_p6 = scmp.lt.u32.totalorder %s479_s26, %s474_s4 }
  0x38   : > { %p477_p11 = pnand %p475_p9, %p446_p5  ;;  %p483_p10 = scmp.lt.u32.totalorder %s474_s4, %s733_s16 }
  0x39   : > { %p482_p4 = por %p481_p6, %p480_p3 }
  0x3a   : > { %p478_p13 = pneg %p477_p11 }
  0x3b   : > { %p484_p12 = por %p483_p10, %p482_p4 }
  0x3d   : > { %p485_p1 = pnand %p484_p12, %p478_p13 }
  0x3f   : > { %488 = shalt.err (!%p485_p1)
}
  0x40   : > { %s489_s25 = scalar_lea.vmem %s167_s19, 32  ;;  %s593_s3 = smov [#allocation5]  }
  0x41   : > { %p490_p2 = scmp.ne.s32.totalorder %s167_s19, %s489_s25  ;;  %s494_s7 = sshll.u32 %s593_s3, 4  ;;  %s495_s7 = int_to_ptr.vmem [resolvable:$false] %s494_s7 }
  0x42   : > { %s496_s8 = scalar_lea.vmem %s495_s7, 64  ;;  %p497_p8 = scmp.lt.s32.totalorder %s167_s19, %s495_s7 }
  0x43   : > { %p492_p9 = pnand %p490_p2, %p446_p5  ;;  %p498_p7 = scmp.lt.s32.totalorder %s496_s8, %s489_s25 }
  0x45   : > { %p493_p11 = pneg %p492_p9  ;;  %p499_p3 = por %p498_p7, %p497_p8 }
  0x47   : > { %p500_p6 = pnand %p499_p3, %p493_p11 }
  0x49   : > { %503 = shalt.err (!%p500_p6)
}
  0x4a   : > { %389 = dma.hbm_to_vmem [thread:$0]  (!%p688_p0), %s733_s16, 32, %s167_s19, %s155_s30  }
  0x4b   : > { %p838_p13 = scmp.ne.s32.totalorder %s837_s29, 0 }
  0x4c   : > { %s758_s15 = sand.u32 (!%p838_p13), 1, %s574_s10   ;;  %p839_p5 = scmp.ne.s32.totalorder (!%p838_p13), %s831_s21, 0 }
  0x4d   : > { %175 = sbr.rel (%p838_p13) target bundleno = 114 (0x72), region = 28  ;;  %s366_s18 = sshll.u32 (!%p838_p13), %s758_s15, 3 }
  0x4e   : > { %s178_s4 = scalar_lea.sflag (!%p838_p13), [#allocation3], %s758_s15  ;;  %s181_s6 = scalar_lea.vmem (!%p838_p13), [#allocation2], %s366_s18 }
  0x54   : > { %557 = dma.done.wait (%p839_p5), %s178_s4, 128  }
  0x55   : > { %559 = vsyncadd (%p839_p5), %s178_s4, 4294967168  ;;  %s367_s5 = sshll.u32 %s758_s15, 1  ;;  %s187_s29 = scalar_lea.sflag [#allocation6], %s758_s15 }
  0x56   : > { %s190_s16 = scalar_lea.vmem [#allocation5], %s367_s5 }
  0x57   : > { %561 = dma.done.wait (%p839_p5), %s187_s29, 32  }
  0x58   : > { %563 = vsyncadd (%p839_p5), %s187_s29, 4294967264  ;;  %v219_v0 = vlaneseq  ;;  %v217_v4 = vld [vmem:[%s190_s16] sm:$0x3]  ;;  %v216_v7 = vld [vmem:[%s181_s6] sm:$0xff]  ;;  %s215_s19 = scalar_lea.vmem [#allocation7], %s366_s18  ;;  %s376_s20 = sshll.u32 %s582_s12, 7 }
  0x59   : > { %s248_s30 = sshll.u32 %s215_s19, 4  ;;  %s778_s27 = scalar_lea.hbm %s827_s2, %s376_s20  ;;  %s773_s30 = int_to_ptr.vmem [resolvable:$true] %s248_s30 }
  0x5a   : > { %v220_v1 = vshrl.u32 %v219_v0, 7  ;;  %s232_s28 = scalar_lea.sflag [#allocation4], %s758_s15  ;;  %s504_s25 = scalar_lea.vmem %s773_s30, 128 }
  0x5b   : > { %p505_p8 = scmp.ne.s32.totalorder %s773_s30, %s504_s25  ;;  %p840_p0 = scmp.ne.s32.totalorder %s832_s22, 0 }
  0x5c   : > { %v221_v2 = vsub.s32 0, %v220_v1  ;;  %v225_v3 = vsub.s32 1, %v220_v1  ;;  %s594_s12 = smov [#allocation7]  }
  0x5d   : > { %p506_p7 = pnand %p505_p8, %p840_p0  ;;  %s508_s3 = sshll.u32 %s594_s12, 4  ;;  %s509_s3 = int_to_ptr.vmem [resolvable:$false] %s508_s3 }
  0x5e   : > { %v222_v5 = vrot.slane %v217_v4, %v221_v2  ;;  %v226_v6 = vrot.slane %v217_v4, %v225_v3  ;;  %s510_s7 = scalar_lea.vmem %s509_s3, 256  ;;  %p511_p10 = scmp.lt.s32.totalorder %s773_s30, %s509_s3 }
  0x5f   : > { %p507_p4 = pneg %p506_p7  ;;  %p512_p12 = scmp.lt.s32.totalorder %s510_s7, %s504_s25 }
  0x60   : > { %v227_v8 = vcombine.low %v222_v5, %v226_v6 }
  0x61   : > { %p513_p1 = por %p512_p12, %p511_p10 }
  0x62   : > { %v229_v9 = vadd.f32 %v227_v8, %v216_v7 }
  0x63   : > { %p514_p2 = pnand %p513_p1, %p507_p4 }
  0x64   : > { %230 = vst [vmem:[%s215_s19] sm:$0xff] %v229_v9 }
  0x65   : > { %517 = shalt.err (!%p514_p2)
}
  0x66   : > { %s518_s8 = scalar_lea.hbm %s778_s27, 128  ;;  %s522_s4 = scalar_lea.hbm %s827_s2, 256 }
  0x67   : > { %p519_p9 = scmp.ne.s32.totalorder %s778_s27, %s518_s8  ;;  %p523_p6 = scmp.lt.u32.totalorder %s778_s27, %s827_s2 }
  0x68   : > { %p524_p13 = scmp.lt.u32.totalorder %s522_s4, %s518_s8  ;;  %p526_p8 = scmp.lt.u32.totalorder %s518_s8, %s778_s27 }
  0x69   : > { %p520_p11 = pnand %p519_p9, %p840_p0 }
  0x6a   : > { %p525_p5 = por %p524_p13, %p523_p6 }
  0x6b   : > { %p521_p3 = pneg %p520_p11 }
  0x6c   : > { %p527_p7 = por %p526_p8, %p525_p5 }
  0x6e   : > { %p528_p4 = pnand %p527_p7, %p521_p3 }
  0x70   : > { %531 = shalt.err (!%p528_p4)
}
  0x71   : > { %381 = dma.vmem_to_hbm [thread:$0]  (%p840_p0), %s773_s30, 128, %s778_s27, %s232_s28  }
  0x72 PF: > { %s260_s29 = sand.u32 1, %s570_s9   ;;  %p841_p10 = scmp.ne.s32.totalorder %s833_s24, 0 }
  0x73   : > { %p842_p12 = scmp.ge.s32.totalorder %s590_s14, 2  ;;  %s261_s16 = scalar_lea.sflag [#allocation4], %s260_s29 }
  0x75   : > { %p391_p1 = pnand %p842_p12, %p841_p10 }
  0x77   : > { %565 = dma.done.wait (!%p391_p1), %s261_s16, 128  }
  0x78   : > { %567 = vsyncadd (!%p391_p1), %s261_s16, 4294967168  ;;  %s21_s14 = sadd.s32 1, %s590_s14   ;;  %s843_s9 = smov %s574_s10 }
  0x79   : > { %p18_p2 = scmp.ge.s32.totalorder %s21_s14, 4   ;;  %s844_s10 = smov %s578_s11 }
  0x7a   : > { %s845_s11 = smov %s666_s23  ;;  %s846_s12 = smov %s586_s13 }
  0x7b   : > { %s847_s13 = smov %s849_s17  ;;  %20 = sbr.rel (!%p18_p2) target bundleno = 8 (0x8), region = 86 }
  0x82   :  { %266 = vsyncpa [#allocation3], 1 }
  0x83   :  { %268 = vsyncpa [#allocation3 + $0x1], 1 }
  0x84   :  { %269 = vsyncpa [#allocation6], 1 }
  0x85   :  { %271 = vsyncpa [#allocation6 + $0x1], 1 }
  0x86   :  { %272 = vsyncpa [#allocation4], 1 }
  0x87   :  { %274 = vsyncpa [#allocation4 + $0x1], 1 }

</bundles_post_ra>
